<compile_context>
chip_gen: v7x
topology: tpu7x:2x2x1
jax: 0.10.0
libtpu: 0.0.40
codegen_flags: <defaults>
</compile_context>

<pallas_src>
import functools

import jax
import jax.numpy as jnp
from jax.experimental import pallas as pl
from jax.experimental.pallas import tpu as pltpu


def _bpr_kernel(pos_ref, neg_ref, out_ref, acc_ref, *,
                B, N, block_b, block_n, acc_rows):
    i = pl.program_id(0)   # batch-block index ("parallel")
    j = pl.program_id(1)   # negatives-block index ("arbitrary" / reduction)

    @pl.when(j == 0)
    def _():
        acc_ref[...] = jnp.zeros_like(acc_ref)

    # Cast per-tile (keeps HBM traffic at the input dtype width).
    pos = pos_ref[...].astype(jnp.float32)        # (block_b, 1)
    neg = neg_ref[...].astype(jnp.float32)        # (block_b, block_n)
    diff = pos - neg                              # lane-broadcast subtract

    # Numerically stable logsigmoid(x) = min(x, 0) - log1p(exp(-|x|))
    ls = jnp.minimum(diff, 0.0) - jnp.log1p(jnp.exp(-jnp.abs(diff)))

    def accumulate(vals):
        # Reduce only the extra sublane-group axis (pure VPU adds); the
        # cross-lane reduce is deferred to the per-batch-block epilogue.
        if block_b == acc_rows:
            acc_ref[...] += vals
        else:
            acc_ref[...] += vals.reshape(
                block_b // acc_rows, acc_rows, block_n).sum(axis=0)

    need_row_mask = (B % block_b) != 0
    need_col_mask = (N % block_n) != 0
    if need_row_mask or need_col_mask:
        # Only edge blocks pay for iota/compare/select; interior blocks take
        # the unmasked fast path.
        conds = []
        if need_row_mask:
            conds.append(i == pl.num_programs(0) - 1)
        if need_col_mask:
            conds.append(j == pl.num_programs(1) - 1)
        is_edge = conds[0]
        for c in conds[1:]:
            is_edge = jnp.logical_or(is_edge, c)

        @pl.when(jnp.logical_not(is_edge))
        def _():
            accumulate(ls)

        @pl.when(is_edge)
        def _():
            masked = ls
            if need_row_mask:
                rows = i * block_b + jax.lax.broadcasted_iota(
                    jnp.int32, (block_b, 1), 0)
                masked = jnp.where(rows < B, masked, 0.0)
            if need_col_mask:
                cols = j * block_n + jax.lax.broadcasted_iota(
                    jnp.int32, (1, block_n), 1)
                masked = jnp.where(cols < N, masked, 0.0)
            accumulate(masked)
    else:
        accumulate(ls)

    @pl.when(j == pl.num_programs(1) - 1)
    def _():
        # One full reduce per batch block; broadcast into the lane-dense
        # output tile (wrapper reads element [0, 0]).
        total = jnp.sum(acc_ref[...])
        out_ref[...] = jnp.full(out_ref.shape, total, dtype=out_ref.dtype)


def _vmem_limit_bytes():
    cap = None
    try:
        cap = getattr(pltpu.get_tpu_info(), "vmem_capacity_bytes", None)
    except Exception:
        cap = None
    if not cap:
        cap = 64 * 1024 * 1024          # conservative: assume v7x (64 MiB/TC)
    # Use at most half of physical VMEM, never below 32 MiB nor above 64 MiB.
    return int(min(64 * 1024 * 1024, max(32 * 1024 * 1024, cap // 2)))


def _pick_tiles(B, N, max_block_b=None, max_block_n=None):
    # Negatives (lane) axis: full extent if small, else a multiple of 128.
    mbn = 2048 if max_block_n is None else max(128, (max_block_n // 128) * 128)
    block_n = N if N <= mbn else mbn

    # Batch (sublane) axis, sized by the ~2 MiB f32 *compute* footprint of a
    # tile: in-kernel temps are f32 regardless of the input dtype.
    f32_budget = 2 * 1024 * 1024
    bb = max(8, min(f32_budget // (block_n * 4), 1024))
    bb = (bb // 8) * 8
    if max_block_b is not None:
        bb = min(bb, max(8, (max_block_b // 8) * 8))

    # Keep the "parallel" batch axis split into >= 2 (ideally 4) blocks so
    # both v7x TensorCores get work and the pipeline has multiple steps.
    if B >= 32:
        target_blocks = 4
    elif B >= 16:
        target_blocks = 2
    else:
        target_blocks = 1
    if target_blocks > 1:
        cap = max(8, ((pl.cdiv(B, target_blocks) + 7) // 8) * 8)
        bb = min(bb, cap)

    if B <= bb and (B % 8 == 0 or B < 8):
        block_b = B                               # whole batch in one block
    else:
        block_b = min(bb, max(8, (B // 8) * 8))   # multiple of 8; tail masked

    # Guarantee a few grid steps so the DMA pipeline can overlap (cheap for a
    # memory-bound kernel); halving keeps block_n a multiple of 128.
    while (pl.cdiv(B, block_b) * pl.cdiv(N, block_n) < 4
           and block_n > 128 and block_n % 256 == 0):
        block_n //= 2

    return block_b, block_n


def bpr_loss(label, pos_score, log_pos_prob, neg_score, log_neg_prob, *,
             dns=False, max_block_b=None, max_block_n=None):
    del label, log_pos_prob, log_neg_prob  # unused in the dns=False branch
    assert not dns, "dns=True branch is not implemented (buggy in reference)"

    B, N = neg_score.shape
    assert pos_score.shape == (B,)

    block_b, block_n = _pick_tiles(B, N, max_block_b, max_block_n)
    grid_b = pl.cdiv(B, block_b)
    grid_n = pl.cdiv(N, block_n)
    acc_rows = 8 if (block_b % 8 == 0 and block_b >= 8) else block_b

    pos2d = pos_score.reshape(B, 1)

    kernel = functools.partial(
        _bpr_kernel, B=B, N=N, block_b=block_b, block_n=block_n,
        acc_rows=acc_rows)

    partials = pl.pallas_call(
        kernel,
        out_shape=jax.ShapeDtypeStruct((grid_b, 8, 128), jnp.float32),
        grid_spec=pltpu.PrefetchScalarGridSpec(
            num_scalar_prefetch=0,
            grid=(grid_b, grid_n),
            in_specs=[
                pl.BlockSpec((block_b, 1), lambda i, j: (i, 0)),
                pl.BlockSpec((block_b, block_n), lambda i, j: (i, j)),
            ],
            out_specs=pl.BlockSpec((1, 8, 128), lambda i, j: (i, 0, 0)),
            scratch_shapes=[pltpu.VMEM((acc_rows, block_n), jnp.float32)],
        ),
        compiler_params=pltpu.CompilerParams(
            dimension_semantics=("parallel", "arbitrary"),
            vmem_limit_bytes=_vmem_limit_bytes(),
        ),
    )(pos2d, neg_score)

    inv_count = 1.0 / float(B * N)
    return -jnp.sum(partials[:, 0, 0]) * inv_count


def _reference(pos_score, neg_score):
    # Pure-JAX reference of the PyTorch dns=False math.
    diff = pos_score[:, None] - neg_score
    ls = jax.nn.log_sigmoid(diff)
    weight = jax.nn.softmax(jnp.ones_like(neg_score), axis=-1)
    return -jnp.mean(jnp.sum(ls * weight, axis=-1))


if __name__ == "__main__":
    key = jax.random.PRNGKey(0)
    k1, k2, k3, k4, k5, k6 = jax.random.split(key, 6)

    # Case 1: aligned small shapes (batch axis split -> grid (2, 1)).
    B, N = 16, 64
    pos_score = jax.random.normal(k1, (B,), dtype=jnp.float32)
    neg_score = jax.random.normal(k2, (B, N), dtype=jnp.float32)
    label = jnp.ones((B,), dtype=jnp.float32)                 # unused (dns=False)
    log_pos_prob = jnp.zeros((B,), jnp.float32)               # unused
    log_neg_prob = jnp.zeros((B, N), jnp.float32)             # unused

    out = bpr_loss(label, pos_score, log_pos_prob, neg_score, log_neg_prob)
    out = jax.block_until_ready(out)
    ref = _reference(pos_score, neg_score)
    assert jnp.allclose(out, ref, atol=1e-5, rtol=1e-5), (out, ref)

    # Case 2: ragged shapes with forced small blocks — multi-block grid with
    # edge-gated tail masking on both axes.
    B2, N2 = 13, 200
    pos2 = jax.random.normal(k3, (B2,), dtype=jnp.float32)
    neg2 = jax.random.normal(k4, (B2, N2), dtype=jnp.float32)
    out2 = bpr_loss(jnp.ones((B2,)), pos2, jnp.zeros((B2,)), neg2,
                    jnp.zeros((B2, N2)), max_block_b=8, max_block_n=128)
    out2 = jax.block_until_ready(out2)
    ref2 = _reference(pos2, neg2)
    assert jnp.allclose(out2, ref2, atol=1e-5, rtol=1e-5), (out2, ref2)

    # Case 3: bf16 inputs (per-tile cast to f32 inside the kernel).
    B3, N3 = 32, 256
    pos3 = jax.random.normal(k5, (B3,), dtype=jnp.bfloat16)
    neg3 = jax.random.normal(k6, (B3, N3), dtype=jnp.bfloat16)
    out3 = bpr_loss(jnp.ones((B3,)), pos3, jnp.zeros((B3,)), neg3,
                    jnp.zeros((B3, N3), jnp.bfloat16))
    out3 = jax.block_until_ready(out3)
    ref3 = _reference(pos3.astype(jnp.float32), neg3.astype(jnp.float32))
    assert jnp.allclose(out3, ref3, atol=1e-5, rtol=1e-5), (out3, ref3)

    print("KERNEL_OK")
</pallas_src>

<mosaic_0001>
module attributes {stable_mosaic.version = 11 : i64} {
  func.func @_bpr_kernel(%arg0: i32, %arg1: i32, %arg2: memref<8x1xf32, #tpu.memory_space<vmem>>, %arg3: memref<8x64xf32, #tpu.memory_space<vmem>>, %arg4: memref<1x8x128xf32, #tpu.memory_space<vmem>>, %arg5: memref<8x64xf32, #tpu.memory_space<vmem>>) attributes {dimension_semantics = [#tpu.dimension_semantics<parallel>, #tpu.dimension_semantics<arbitrary>], iteration_bounds = array<i64: 2, 1>, scalar_prefetch = 0 : i64, scratch_operands = 1 : i64, tpu.core_type = #tpu.core_type<tc>, window_params = [{transform_indices = @transform_0, window_bounds = array<i64: 8, 1>}, {transform_indices = @transform_1, window_bounds = array<i64: 8, 64>}, {transform_indices = @transform_2, window_bounds = array<i64: 1, 8, 128>}]} {
    %c0_i32 = arith.constant 0 : i32
    %0 = arith.cmpi eq, %arg1, %c0_i32 : i32
    %1 = arith.extui %0 : i1 to i32
    %c0_i32_0 = arith.constant 0 : i32
    %2 = arith.cmpi ne, %1, %c0_i32_0 : i32
    scf.if %2 {
      %cst_11 = arith.constant 0.000000e+00 : f32
      %21 = vector.broadcast %cst_11 : f32 to vector<8x64xf32>
      %c0_12 = arith.constant 0 : index
      %c0_13 = arith.constant 0 : index
      %22 = vector.load %arg5[%c0_12, %c0_13] : memref<8x64xf32, #tpu.memory_space<vmem>>, vector<8x64xf32>
      tpu.vector_store %arg5[%c0_12, %c0_13], %21 {strides = array<i32>} : memref<8x64xf32, #tpu.memory_space<vmem>>, vector<8x64xf32>,
    } else {
    }
    %c0 = arith.constant 0 : index
    %c0_1 = arith.constant 0 : index
    %3 = vector.load %arg2[%c0, %c0_1] : memref<8x1xf32, #tpu.memory_space<vmem>>, vector<8x1xf32>
    %c0_2 = arith.constant 0 : index
    %c0_3 = arith.constant 0 : index
    %4 = vector.load %arg3[%c0_2, %c0_3] : memref<8x64xf32, #tpu.memory_space<vmem>>, vector<8x64xf32>
    %5 = vector.broadcast %3 : vector<8x1xf32> to vector<8x64xf32>
    %6 = arith.subf %5, %4 : vector<8x64xf32>
    %cst = arith.constant 0.000000e+00 : f32
    %7 = vector.broadcast %cst : f32 to vector<8x64xf32>
    %8 = arith.minimumf %6, %7 : vector<8x64xf32>
    %9 = math.absf %6 : vector<8x64xf32>
    %cst_4 = arith.constant 0.000000e+00 : f32
    %10 = vector.broadcast %cst_4 : f32 to vector<8x64xf32>
    %11 = arith.subf %10, %9 : vector<8x64xf32>
    %12 = math.exp %11 : vector<8x64xf32>
    %13 = math.log1p %12 : vector<8x64xf32>
    %14 = arith.subf %8, %13 : vector<8x64xf32>
    %c0_5 = arith.constant 0 : index
    %c0_6 = arith.constant 0 : index
    %15 = vector.load %arg5[%c0_5, %c0_6] : memref<8x64xf32, #tpu.memory_space<vmem>>, vector<8x64xf32>
    %16 = arith.addf %15, %14 : vector<8x64xf32>
    %c0_7 = arith.constant 0 : index
    %c0_8 = arith.constant 0 : index
    %17 = vector.load %arg5[%c0_7, %c0_8] : memref<8x64xf32, #tpu.memory_space<vmem>>, vector<8x64xf32>
    tpu.vector_store %arg5[%c0_7, %c0_8], %16 {strides = array<i32>} : memref<8x64xf32, #tpu.memory_space<vmem>>, vector<8x64xf32>,
    %c0_i32_9 = arith.constant 0 : i32
    %18 = arith.cmpi eq, %arg1, %c0_i32_9 : i32
    %19 = arith.extui %18 : i1 to i32
    %c0_i32_10 = arith.constant 0 : i32
    %20 = arith.cmpi ne, %19, %c0_i32_10 : i32
    scf.if %20 {
      %c0_11 = arith.constant 0 : index
      %c0_12 = arith.constant 0 : index
      %21 = vector.load %arg5[%c0_11, %c0_12] : memref<8x64xf32, #tpu.memory_space<vmem>>, vector<8x64xf32>
      %22 = vector.shape_cast %21 : vector<8x64xf32> to vector<1x8x64xf32>
      %cst_13 = arith.constant dense<0.000000e+00> : vector<1xf32>
      %23 = vector.multi_reduction <add>, %22, %cst_13 [1, 2] : vector<1x8x64xf32> to vector<1xf32>
      %24 = vector.shape_cast %23 : vector<1xf32> to vector<1x1x1xf32>
      %25 = vector.extract %24[0, 0, 0] : f32 from vector<1x1x1xf32>
      %26 = vector.broadcast %25 : f32 to vector<1x8x128xf32>
      %c0_14 = arith.constant 0 : index
      %c0_15 = arith.constant 0 : index
      %c0_16 = arith.constant 0 : index
      %27 = vector.load %arg4[%c0_14, %c0_15, %c0_16] : memref<1x8x128xf32, #tpu.memory_space<vmem>>, vector<1x8x128xf32>
      tpu.vector_store %arg4[%c0_14, %c0_15, %c0_16], %26 {strides = array<i32>} : memref<1x8x128xf32, #tpu.memory_space<vmem>>, vector<1x8x128xf32>,
    } else {
    }
    return
  }
  func.func @transform_0(%arg0: i32, %arg1: i32) -> (i32, i32) {
    %c0_i32 = arith.constant 0 : i32
    %c0_i32_0 = arith.constant 0 : i32
    return %arg0, %c0_i32 : i32, i32
  }
  func.func @transform_1(%arg0: i32, %arg1: i32) -> (i32, i32) {
    %c0_i32 = arith.constant 0 : i32
    return %arg0, %arg1 : i32, i32
  }
  func.func @transform_2(%arg0: i32, %arg1: i32) -> (i32, i32, i32) {
    %c0_i32 = arith.constant 0 : i32
    %c0_i32_0 = arith.constant 0 : i32
    %c0_i32_1 = arith.constant 0 : i32
    return %arg0, %c0_i32, %c0_i32_0 : i32, i32, i32
  }
}

</mosaic_0001>

<bundles_post_ra>
// kernel: tpu_custom_call.1
= control target key start
LH: loop header
LB: loop body
LE: loop exit
PB: predicated region body
PF: predicated region fallthrough
CT: control target
= control target key end

     0   :  { %7 = vsyncpa [#allocation4], 0  ;;  %s616_s0 = inlined_call_operand.vmem [shape: f32[16,1], index: 0, kind: input, shape index: {}]   ;;  %s617_s1 = inlined_call_operand.vmem [shape: f32[16,64], index: 1, kind: input, shape index: {}]   ;;  %s618_s2 = inlined_call_operand.hbm [shape: f32[2,8,128], index: 2, kind: output, shape index: {}]  }
   0x1   :  { %9 = vsyncpa [#allocation4 + $0x1], 0  ;;  %s498_s9 = smov 0   ;;  %s500_s10 = smov 0  }
   0x2   :  { %s502_s11 = smov 0   ;;  %s504_s12 = smov 0  }
   0x3   :  { %s506_s13 = smov 0   ;;  %s508_s14 = smov 0  }
   0x4 LB: > { %s324_s15 = sadd.s32 4294967295, %s478_s14   ;;  %s325_s16 = sadd.s32 4294967294, %s478_s14   ;;  %s478_s14 = sphi %s508_s14, %s15_s14   ;;  %s474_s13 = sphi %s506_s13, %s625_s13   ;;  %s470_s12 = sphi %s504_s12, %s624_s12   ;;  %s466_s11 = sphi %s502_s11, %s623_s11   ;;  %s462_s10 = sphi %s500_s10, %s622_s10   ;;  %s458_s9 = sphi %s498_s9, %s621_s9  }
   0x5   : > { %s27_s17 = sadd.s32 1, %s474_s13  ;;  %s88_s18 = sadd.s32 1, %s466_s11 }
   0x6   : > { %p29_p0 = scmp.ge.s32.totalorder %s27_s17, 2  ;;  %p98_p1 = scmp.ne.s32.totalorder %s466_s11, %s462_s10 }
   0x7   : > { %p99_p2 = scmp.eq.s32.totalorder %s324_s15, 1  ;;  %p104_p3 = scmp.ne.s32.totalorder %s462_s10, %s458_s9 }
   0x8   : > { %s627_s17 = smov (%p29_p0, %s27_s17), 0  ;;  %p105_p5 = scmp.eq.s32.totalorder %s325_s16, 1 }
   0x9   : > { %p538_p4 = por %p99_p2, %p98_p1  ;;  %s85_s20 = ssub.s32 %s474_s13, %s627_s17 }
   0xa   : > { %p328_p6 = scmp.ge.s32.totalorder %s478_s14, 1  ;;  %p86_p7 = scmp.eq.s32.totalorder %s85_s20, 0 }
   0xb   : > { %p545_p8 = por %p105_p5, %p104_p3  ;;  %p140_p9 = scmp.lt.s32.totalorder %s478_s14, 3 }
   0xc   : > { %s551_s22 = scalar_select %p86_p7, %s466_s11, %s88_s18  }
   0xd   : > { %p141_p10 = pnand %p328_p6, %p140_p9 }
   0xe   : > { %p168_p11 = scmp.lt.s32.totalorder (!%p141_p10), %s470_s12, 1  ;;  %v480_v0 = vmov (!%p141_p10), 0   ;;  %vm183_vm0 = vcmask (!%p141_p10), 523264   ;;  %v481_v2 = vmov (!%p141_p10), 0.0   ;;  %s165_s3 = sand.u32 (!%p141_p10), 1, %s462_s10  }
   0xf   : > { %144 = sbr.rel (%p141_p10) target bundleno = 422 (0x1a6), region = 28  ;;  %395 = vset.pattern.permute.xlu0 (!%p141_p10), %v480_v0  ;;  %184 = vst.msk [vmem:[#allocation2] sm:$0xff] (!%p141_p10), %vm183_vm0, %v481_v2  ;;  %s329_s4 = sshll.u32 (!%p141_p10), %s165_s3, 3 }
  0x10   : > { %s167_s5 = scalar_lea.vmem (!%p141_p10), [#allocation3], %s329_s4  ;;  %s333_s7 = sshll.u32 (!%p141_p10), %s470_s12, 7 }
  0x11   : > { %s242_s6 = sshll.u32 (!%p141_p10), %s167_s5, 4  ;;  %s571_s18 = scalar_lea.hbm (!%p141_p10), %s618_s2, %s333_s7  ;;  %s566_s6 = int_to_ptr.vmem [resolvable:$true] %s242_s6 }
  0x12   : > { %s229_s20 = scalar_lea.sflag (!%p141_p10), [#allocation4], %s165_s3 }
  0x16   : > { %s169_s23 = scalar_select %p168_p11, %s470_s12, 1  ;;  %v208_v19 = vld [vmem:[#allocation2] sm:$0xff] }
  0x17   : > { %s482_s12 = smov [#allocation3]  }
  0x18   : > { %s330_s24 = sshll.u32 %s169_s23, 3  ;;  %s400_s23 = scalar_lea.vmem %s566_s6, 128 }
  0x19   : > { %s171_s27 = scalar_lea.vmem %s616_s0, %s330_s24  ;;  %s178_s30 = scalar_lea.vmem %s617_s1, %s330_s24 }
  0x1a   : > { %v185_v1 = vld [vmem:[%s171_s27] sm:$0xff]  ;;  %p401_p12 = scmp.ne.s32.totalorder %s566_s6, %s400_s23  ;;  %s404_s24 = sshll.u32 %s482_s12, 4  ;;  %s405_s24 = int_to_ptr.vmem [resolvable:$false] %s404_s24 }
  0x1b   : > { %189 = vperm.xlu0 %395, %v185_v1   ;;  %v186_v3 = vld [vmem:[%s178_s30] sm:$0xff]  ;;  %s406_s25 = scalar_lea.vmem %s405_s24, 256  ;;  %p407_p1 = scmp.lt.s32.totalorder %s566_s6, %s405_s24 }
  0x1c   : > { %p402_p13 = pnand %p401_p12, %p538_p4  ;;  %p408_p2 = scmp.lt.s32.totalorder %s406_s25, %s400_s23 }
  0x1e   : > { %p403_p0 = pneg %p402_p13  ;;  %p409_p3 = por %p408_p2, %p407_p1 }
  0x20   : > { %p410_p5 = pnand %p409_p3, %p403_p0 }
  0x9a   : > { %v190_v4 = vpop.permute.xlu0 %189 }
  0x9b   : > { %v192_v5 = vsub.f32 %v190_v4, %v186_v3 }
  0x9d   : > { %v194_v6 = vand.u32 2147483647, %v192_v5  ;;  %v193_v17 = vmin.f32 %v192_v5, 0.0 }
  0x9f   : > { %v195_v7 = vsub.f32 0.0, %v194_v6 }
  0xa1   : > { %v196_v8 = vmul.f32 1.442695, %v195_v7 }
  0xa3   : > { %396 = vpow2.f32 %v196_v8 }
  0xad   : > { %v397_v9 = vpop.eup %396 }
  0xae   : > { %v198_v10 = vadd.f32 1.0, %v397_v9  ;;  %v201_v11 = vmul.f32 -0.5, %v397_v9  ;;  %v204_v13 = vand.u32 2147483647, %v397_v9 }
  0xb0   : > { %398 = vlog2.f32 %v198_v10  ;;  %v202_v12 = vadd.f32 1.0, %v201_v11  ;;  %vm205_vm1 = vcmp.lt.f32.partialorder %v204_v13, 0.0004427343 }
  0xb2   : > { %v203_v16 = vmul.f32 %v397_v9, %v202_v12 }
  0xba   : > { %v399_v14 = vpop.eup %398 }
  0xbb   : > { %v200_v15 = vmul.f32 0.6931472, %v399_v14 }
  0xbd   : > { %v206_v18 = vsel %vm205_vm1, %v203_v16, %v200_v15 }
  0xbe   : > { %v207_v20 = vsub.f32 %v193_v17, %v206_v18 }
  0xc0   : > { %v209_v21 = vadd.f32 %v208_v19, %v207_v20 }
  0xc2   : > { %211 = vst.msk [vmem:[#allocation2] sm:$0xff] %vm183_vm0, %v209_v21 }
  0xc9   : > { %v215_v22 = vld [vmem:[#allocation2] sm:$0xff] }
  0xca   : > { %v216_v23 = vsel %vm183_vm0, %v215_v22, 0.0 }
  0xcb   : > { %217 = vadd.xlane.f32.xlu0 %v216_v23 }
 0x158   : > { %v218_v24 = vpop.xlane.xlu0 %217 }
 0x159   : > { %v219_v25 = vrot.slane %v218_v24, 4 }
 0x15b   : > { %v220_v26 = vadd.f32 %v219_v25, %v218_v24 }
 0x15d   : > { %v221_v27 = vrot.slane %v220_v26, 2 }
 0x15f   : > { %v222_v28 = vadd.f32 %v221_v27, %v220_v26 }
 0x161   : > { %v223_v29 = vrot.slane %v222_v28, 1 }
 0x163   : > { %v224_v30 = vadd.f32 %v223_v29, %v222_v28 }
 0x165   : > { %336 = vpush %v224_v30 }
 0x196   : > { %s337_s8 = spop %336 }
 0x197   : > { %v226_v31 = vstv %s337_s8 }
 0x198   : > { %227 = vst [vmem:[%s167_s5] sm:$0xff] %v226_v31 }
 0x199   : > { %413 = shalt.err (!%p410_p5)
}
 0x19a   : > { %s414_s26 = scalar_lea.hbm %s571_s18, 128  ;;  %s418_s29 = scalar_lea.hbm %s618_s2, 256 }
 0x19b   : > { %p415_p6 = scmp.ne.s32.totalorder %s571_s18, %s414_s26  ;;  %p419_p10 = scmp.lt.u32.totalorder %s571_s18, %s618_s2 }
 0x19c   : > { %p420_p11 = scmp.lt.u32.totalorder %s418_s29, %s414_s26  ;;  %p422_p13 = scmp.lt.u32.totalorder %s414_s26, %s571_s18 }
 0x19d   : > { %p416_p7 = pnand %p415_p6, %p538_p4 }
 0x19e   : > { %p421_p12 = por %p420_p11, %p419_p10 }
 0x19f   : > { %p417_p9 = pneg %p416_p7 }
 0x1a0   : > { %p423_p0 = por %p422_p13, %p421_p12 }
 0x1a2   : > { %p424_p1 = pnand %p423_p0, %p417_p9 }
 0x1a4   : > { %427 = shalt.err (!%p424_p1)
}
 0x1a5   : > { %338 = dma.vmem_to_hbm [thread:$0]  (%p538_p4), %s566_s6, 128, %s571_s18, %s229_s20  }
 0x1a6 PF: > { %p344_p2 = scmp.ge.s32.totalorder %s478_s14, 2  ;;  %s254_s4 = sand.u32 1, %s458_s9  }
 0x1a7   : > { %s255_s5 = scalar_lea.sflag [#allocation4], %s254_s4 }
 0x1a8   : > { %p341_p3 = pnand %p344_p2, %p545_p8 }
 0x1aa   : > { %453 = dma.done.wait (!%p341_p3), %s255_s5, 128  }
 0x1ab   : > { %455 = vsyncadd (!%p341_p3), %s255_s5, 4294967168  ;;  %s15_s14 = sadd.s32 1, %s478_s14   ;;  %s621_s9 = smov %s462_s10 }
 0x1ac   : > { %p12_p5 = scmp.ge.s32.totalorder %s15_s14, 4   ;;  %s622_s10 = smov %s466_s11 }
 0x1ad   : > { %s623_s11 = smov %s551_s22  ;;  %s624_s12 = smov %s474_s13 }
 0x1ae   : > { %s625_s13 = smov %s627_s17  ;;  %14 = sbr.rel (!%p12_p5) target bundleno = 4 (0x4), region = 74 }
 0x1b5   :  { %260 = vsyncpa [#allocation4], 1 }
 0x1b6   :  { %262 = vsyncpa [#allocation4 + $0x1], 1 }

</bundles_post_ra>
